<compile_context>
chip_gen: v7x
topology: tpu7x:2x2x1
jax: 0.10.0
libtpu: 0.0.40
codegen_flags: <defaults>
</compile_context>

<pallas_src>
import jax
import jax.numpy as jnp
from jax.experimental import pallas as pl
from jax.experimental.pallas import tpu as pltpu


def _ae_kernel(x_ref, w1_ref, b1_ref, w2_ref, b2_ref, o_ref):
    # Encoder: Linear + ReLU  (MXU matmul, f32 accumulate; bias+ReLU on VPU)
    h = jnp.dot(x_ref[...], w1_ref[...], preferred_element_type=jnp.float32)
    h = jnp.maximum(h + b1_ref[...], 0.0)          # (tb, Hp) + (1, Hp) broadcast

    # Decoder: Linear + Sigmoid (exp on EUP; approximate reciprocal on EUP)
    y = jnp.dot(h, w2_ref[...], preferred_element_type=jnp.float32)
    y = y + b2_ref[...]                            # (tb, out) + (1, out) broadcast
    sig = pl.reciprocal(1.0 + jnp.exp(-y), approx=True)
    o_ref[...] = sig.astype(o_ref.dtype)


def _round_up(n, m):
    return ((n + m - 1) // m) * m


def autoencoder_forward(x, w1, b1, w2, b2, *, block_b=512):
    """AutoEncoder forward: sigmoid(relu(x @ w1 + b1) @ w2 + b2).

    x:  (B, in_dim) f32
    w1: (in_dim, hidden),  b1: (hidden,)   -- encoder weight pre-transposed vs torch
    w2: (hidden, out_dim), b2: (out_dim,)  -- decoder weight pre-transposed vs torch
    """
    B, in_dim = x.shape
    hidden = w1.shape[1]
    out_dim = w2.shape[1]
    dtype = x.dtype
    itemsize = jnp.dtype(dtype).itemsize

    # --- Pad hidden to a full lane multiple (>=128). Numerically exact. ---
    hidden_p = _round_up(max(hidden, 128), 128)
    if hidden_p != hidden:
        w1 = jnp.pad(w1, ((0, 0), (0, hidden_p - hidden)))
        b1 = jnp.pad(b1, (0, hidden_p - hidden))
        w2 = jnp.pad(w2, ((0, hidden_p - hidden), (0, 0)))

    # --- Batch tile: multiple of 8 sublanes, no larger than (padded) B, and
    #     capped so 2x(double-buffered) x/out tiles fit v7x's 64 MiB VMEM. ---
    block_b = _round_up(max(8, min(block_b, _round_up(B, 8))), 8)
    bytes_per_row = (in_dim + out_dim) * itemsize
    max_rows = max(8, ((48 * 1024 * 1024) // (2 * bytes_per_row) // 8) * 8)
    block_b = min(block_b, max_rows)

    # --- Pad batch so any B works; tail rows are dropped after the call. ---
    B_pad = _round_up(B, block_b)
    if B_pad != B:
        x = jnp.pad(x, ((0, B_pad - B), (0, 0)))

    b1_2d = b1.reshape(1, hidden_p)
    b2_2d = b2.reshape(1, out_dim)

    weight_bytes = (in_dim * hidden_p + hidden_p + hidden_p * out_dim + out_dim) * itemsize
    vmem_needed = 2 * block_b * bytes_per_row + 2 * weight_bytes
    vmem_limit = int(min(max(vmem_needed + (8 << 20), 32 << 20), 60 << 20))

    grid = (B_pad // block_b,)

    out = pl.pallas_call(
        _ae_kernel,
        out_shape=jax.ShapeDtypeStruct((B_pad, out_dim), dtype),
        grid_spec=pltpu.PrefetchScalarGridSpec(
            num_scalar_prefetch=0,
            grid=grid,
            in_specs=[
                pl.BlockSpec((block_b, in_dim), lambda i: (i, 0)),    # x tile (pipelined)
                # Constant index_map -> weights/biases stay resident in VMEM and
                # are not re-DMA'd per grid step.  They are <0.5 MiB here; if the
                # model scales, pipeline_mode=pl.Buffered(1) would reclaim the
                # second buffer for a bigger batch tile.
                pl.BlockSpec((in_dim, hidden_p), lambda i: (0, 0)),   # W1
                pl.BlockSpec((1, hidden_p), lambda i: (0, 0)),        # b1
                pl.BlockSpec((hidden_p, out_dim), lambda i: (0, 0)),  # W2
                pl.BlockSpec((1, out_dim), lambda i: (0, 0)),         # b2
            ],
            out_specs=pl.BlockSpec((block_b, out_dim), lambda i: (i, 0)),
        ),
        compiler_params=pltpu.CompilerParams(
            dimension_semantics=("parallel",),    # megacore / dual-TC sharding
            vmem_limit_bytes=vmem_limit,
        ),
    )(x, w1, b1_2d, w2, b2_2d)

    return out[:B]


def _torch_like_linear_init(key, fan_in, fan_out):
    """Mimic nn.Linear default init: U(-1/sqrt(fan_in), 1/sqrt(fan_in)).
    Returns weight pre-transposed to (fan_in, fan_out) plus bias (fan_out,)."""
    kw, kb = jax.random.split(key)
    bound = 1.0 / jnp.sqrt(fan_in)
    w = jax.random.uniform(kw, (fan_in, fan_out), jnp.float32, -bound, bound)
    b = jax.random.uniform(kb, (fan_out,), jnp.float32, -bound, bound)
    return w, b


def _reference(x, w1, b1, w2, b2):
    h = jnp.maximum(x @ w1 + b1, 0.0)
    return jax.nn.sigmoid(h @ w2 + b2)


if __name__ == "__main__":
    # Small shapes consistent with the module: 16x16 images flattened -> in_dim=256,
    # hidden_size=30 (like the module default 30), out_dim = in_dim.
    B, H_img, W_img = 4, 16, 16
    in_dim = H_img * W_img          # 256
    hidden_size = 30
    out_dim = in_dim

    key = jax.random.PRNGKey(0)
    k_x, k_l1, k_l2, k_x2 = jax.random.split(key, 4)

    # Flattened image batch (the PyTorch code flattens size(2)*size(3)).
    images = jax.random.uniform(k_x, (B, 1, H_img, W_img), jnp.float32)
    x = images.reshape(B, in_dim)

    w1, b1 = _torch_like_linear_init(k_l1, in_dim, hidden_size)
    w2, b2 = _torch_like_linear_init(k_l2, hidden_size, out_dim)

    # Small run (exercises hidden padding 30->128 and batch padding 4->8).
    out = jax.block_until_ready(autoencoder_forward(x, w1, b1, w2, b2))
    y_ref = _reference(x, w1, b1, w2, b2)
    assert out.shape == (B, out_dim)
    assert jnp.allclose(out, y_ref, atol=5e-3, rtol=5e-3), float(
        jnp.max(jnp.abs(out - y_ref)))

    # Larger run (multi-step grid + tail tile: B=1000 with block_b=512 -> grid of 2).
    B2 = 1000
    x2 = jax.random.uniform(k_x2, (B2, in_dim), jnp.float32)
    out2 = jax.block_until_ready(autoencoder_forward(x2, w1, b1, w2, b2, block_b=512))
    y2_ref = _reference(x2, w1, b1, w2, b2)
    assert out2.shape == (B2, out_dim)
    assert jnp.allclose(out2, y2_ref, atol=5e-3, rtol=5e-3), float(
        jnp.max(jnp.abs(out2 - y2_ref)))

    print("KERNEL_OK")
</pallas_src>

<mosaic_0001>
module attributes {stable_mosaic.version = 11 : i64} {
  func.func @_ae_kernel(%arg0: i32, %arg1: memref<8x256xf32, #tpu.memory_space<vmem>>, %arg2: memref<256x128xf32, #tpu.memory_space<vmem>>, %arg3: memref<1x128xf32, #tpu.memory_space<vmem>>, %arg4: memref<128x256xf32, #tpu.memory_space<vmem>>, %arg5: memref<1x256xf32, #tpu.memory_space<vmem>>, %arg6: memref<8x256xf32, #tpu.memory_space<vmem>>) attributes {dimension_semantics = [#tpu.dimension_semantics<parallel>], iteration_bounds = array<i64: 1>, scalar_prefetch = 0 : i64, scratch_operands = 0 : i64, tpu.core_type = #tpu.core_type<tc>, window_params = [{transform_indices = @transform_0, window_bounds = array<i64: 8, 256>}, {pipeline_mode = #tpu.pipeline_mode<synchronous>, transform_indices = @transform_1, window_bounds = array<i64: 256, 128>}, {pipeline_mode = #tpu.pipeline_mode<synchronous>, transform_indices = @transform_2, window_bounds = array<i64: 1, 128>}, {pipeline_mode = #tpu.pipeline_mode<synchronous>, transform_indices = @transform_3, window_bounds = array<i64: 128, 256>}, {pipeline_mode = #tpu.pipeline_mode<synchronous>, transform_indices = @transform_4, window_bounds = array<i64: 1, 256>}, {transform_indices = @transform_5, window_bounds = array<i64: 8, 256>}]} {
    %c0 = arith.constant 0 : index
    %c0_0 = arith.constant 0 : index
    %0 = vector.load %arg1[%c0, %c0_0] : memref<8x256xf32, #tpu.memory_space<vmem>>, vector<8x256xf32>
    %c0_1 = arith.constant 0 : index
    %c0_2 = arith.constant 0 : index
    %1 = vector.load %arg2[%c0_1, %c0_2] : memref<256x128xf32, #tpu.memory_space<vmem>>, vector<256x128xf32>
    %cst = arith.constant dense<0.000000e+00> : vector<8x128xf32>
    %2 = tpu.matmul %0, %1, %cst {dimension_numbers = #tpu.dot_dimension_numbers<[1], [0], [0], [1], [0, 0, 1, 1], [], []>} : vector<8x256xf32>, vector<256x128xf32>, vector<8x128xf32> -> vector<8x128xf32>
    %c0_3 = arith.constant 0 : index
    %c0_4 = arith.constant 0 : index
    %3 = vector.load %arg3[%c0_3, %c0_4] : memref<1x128xf32, #tpu.memory_space<vmem>>, vector<1x128xf32>
    %4 = vector.broadcast %3 : vector<1x128xf32> to vector<8x128xf32>
    %5 = arith.addf %2, %4 : vector<8x128xf32>
    %cst_5 = arith.constant 0.000000e+00 : f32
    %6 = vector.broadcast %cst_5 : f32 to vector<8x128xf32>
    %7 = arith.maximumf %5, %6 : vector<8x128xf32>
    %c0_6 = arith.constant 0 : index
    %c0_7 = arith.constant 0 : index
    %8 = vector.load %arg4[%c0_6, %c0_7] : memref<128x256xf32, #tpu.memory_space<vmem>>, vector<128x256xf32>
    %cst_8 = arith.constant dense<0.000000e+00> : vector<8x256xf32>
    %9 = tpu.matmul %7, %8, %cst_8 {dimension_numbers = #tpu.dot_dimension_numbers<[1], [0], [0], [1], [0, 0, 1, 1], [], []>} : vector<8x128xf32>, vector<128x256xf32>, vector<8x256xf32> -> vector<8x256xf32>
    %c0_9 = arith.constant 0 : index
    %c0_10 = arith.constant 0 : index
    %10 = vector.load %arg5[%c0_9, %c0_10] : memref<1x256xf32, #tpu.memory_space<vmem>>, vector<1x256xf32>
    %11 = vector.broadcast %10 : vector<1x256xf32> to vector<8x256xf32>
    %12 = arith.addf %9, %11 : vector<8x256xf32>
    %cst_11 = arith.constant 0.000000e+00 : f32
    %13 = vector.broadcast %cst_11 : f32 to vector<8x256xf32>
    %14 = arith.subf %13, %12 : vector<8x256xf32>
    %15 = math.exp %14 : vector<8x256xf32>
    %cst_12 = arith.constant 1.000000e+00 : f32
    %16 = vector.broadcast %cst_12 : f32 to vector<8x256xf32>
    %17 = arith.addf %16, %15 : vector<8x256xf32>
    %18 = tpu.reciprocal %17 {approx = true} : vector<8x256xf32> -> vector<8x256xf32>
    %c0_13 = arith.constant 0 : index
    %c0_14 = arith.constant 0 : index
    %19 = vector.load %arg6[%c0_13, %c0_14] : memref<8x256xf32, #tpu.memory_space<vmem>>, vector<8x256xf32>
    tpu.vector_store %arg6[%c0_13, %c0_14], %18 {strides = array<i32>} : memref<8x256xf32, #tpu.memory_space<vmem>>, vector<8x256xf32>,
    return
  }
  func.func @transform_0(%arg0: i32) -> (i32, i32) {
    %c0_i32 = arith.constant 0 : i32
    %c0_i32_0 = arith.constant 0 : i32
    return %arg0, %c0_i32 : i32, i32
  }
  func.func @transform_1(%arg0: i32) -> (i32, i32) {
    %c0_i32 = arith.constant 0 : i32
    %c0_i32_0 = arith.constant 0 : i32
    %c0_i32_1 = arith.constant 0 : i32
    return %c0_i32, %c0_i32_0 : i32, i32
  }
  func.func @transform_2(%arg0: i32) -> (i32, i32) {
    %c0_i32 = arith.constant 0 : i32
    %c0_i32_0 = arith.constant 0 : i32
    %c0_i32_1 = arith.constant 0 : i32
    return %c0_i32, %c0_i32_0 : i32, i32
  }
  func.func @transform_3(%arg0: i32) -> (i32, i32) {
    %c0_i32 = arith.constant 0 : i32
    %c0_i32_0 = arith.constant 0 : i32
    %c0_i32_1 = arith.constant 0 : i32
    return %c0_i32, %c0_i32_0 : i32, i32
  }
  func.func @transform_4(%arg0: i32) -> (i32, i32) {
    %c0_i32 = arith.constant 0 : i32
    %c0_i32_0 = arith.constant 0 : i32
    %c0_i32_1 = arith.constant 0 : i32
    return %c0_i32, %c0_i32_0 : i32, i32
  }
  func.func @transform_5(%arg0: i32) -> (i32, i32) {
    %c0_i32 = arith.constant 0 : i32
    %c0_i32_0 = arith.constant 0 : i32
    return %arg0, %c0_i32 : i32, i32
  }
}

</mosaic_0001>

<bundles_post_ra>
// kernel: tpu_custom_call.1
= control target key start
LH: loop header
LB: loop body
LE: loop exit
PB: predicated region body
PF: predicated region fallthrough
CT: control target
= control target key end

     0   :  { %10 = vsyncpa [#allocation3], 0  ;;  %s619_s0 = inlined_call_operand.hbm [shape: f32[8,256], index: 0, kind: input, shape index: {}]   ;;  %s620_s1 = inlined_call_operand.hbm [shape: f32[256,128], index: 1, kind: input, shape index: {}]   ;;  %s621_s2 = inlined_call_operand.vmem [shape: f32[1,128], index: 2, kind: input, shape index: {}]   ;;  %s622_s3 = inlined_call_operand.hbm [shape: f32[128,256], index: 3, kind: input, shape index: {}]   ;;  %s623_s4 = inlined_call_operand.vmem [shape: f32[1,256], index: 4, kind: input, shape index: {}]   ;;  %s624_s5 = inlined_call_operand.hbm [shape: f32[8,256], index: 5, kind: output, shape index: {}]  }
   0x1   :  { %11 = vsyncpa [#allocation6], 0 }
   0x2   :  { %12 = vsyncpa [#allocation4], 0  ;;  %s526_s18 = smov [#allocation5]   ;;  %s432_s22 = scalar_lea.hbm %s620_s1, 4096 }
   0x3   :  { %s28_s19 = sshll.u32 %s526_s18, 4  ;;  %p433_p0 = scmp.ne.s32.totalorder %s620_s1, %s432_s22  ;;  %s29_s19 = int_to_ptr.vmem [resolvable:$true] %s28_s19 }
   0x4   :  { %p436_p1 = scmp.lt.u32.totalorder %s432_s22, %s620_s1 }
   0x6   :  { %p438_p2 = pnand %p436_p1, %p433_p0 }
   0x8   :  { %441 = shalt.err (!%p438_p2)
}
   0x9   :  { %s442_s27 = scalar_lea.vmem %s29_s19, 4096  ;;  %p447_p4 = scmp.lt.s32.totalorder %s29_s19, %s29_s19 }
   0xa   :  { %p443_p3 = scmp.ne.s32.totalorder %s29_s19, %s442_s27  ;;  %p448_p5 = scmp.lt.s32.totalorder %s442_s27, %s442_s27 }
   0xc   :  { %p449_p6 = por %p448_p5, %p447_p4 }
   0xe   :  { %p450_p7 = pnand %p449_p6, %p443_p3 }
  0x10   :  { %453 = shalt.err (!%p450_p7)
}
  0x11   :  { %s527_s28 = smov 128   ;;  %s528_s29 = smov 8  }
  0x12   :  { %34 = dma.hbm_to_vmem [thread:$0]  %s620_s1, 4096, %s29_s19, [#allocation6], %s527_s28, %s527_s28, %s528_s29  }
  0x13   :  { %s529_s7 = smov [#allocation2]   ;;  %s530_s9 = smov [#allocation7]  }
  0x14   :  { %s19_s8 = sshll.u32 %s529_s7, 4  ;;  %s42_s10 = sshll.u32 %s530_s9, 4  ;;  %s20_s8 = int_to_ptr.vmem [resolvable:$true] %s19_s8  ;;  %s43_s10 = int_to_ptr.vmem [resolvable:$true] %s42_s10 }
  0x15   :  { %s454_s13 = scalar_lea.hbm %s619_s0, 256 }
  0x16   :  { %p455_p8 = scmp.ne.s32.totalorder %s619_s0, %s454_s13  ;;  %p458_p9 = scmp.lt.u32.totalorder %s454_s13, %s619_s0 }
  0x18   :  { %p460_p10 = pnand %p458_p9, %p455_p8 }
  0x1a   :  { %463 = shalt.err (!%p460_p10)
}
  0x1b   :  { %s464_s1 = scalar_lea.vmem %s20_s8, 256  ;;  %p469_p12 = scmp.lt.s32.totalorder %s20_s8, %s20_s8 }
  0x1c   :  { %p465_p11 = scmp.ne.s32.totalorder %s20_s8, %s464_s1  ;;  %p470_p13 = scmp.lt.s32.totalorder %s464_s1, %s464_s1 }
  0x1e   :  { %p471_p0 = por %p470_p13, %p469_p12 }
  0x20   :  { %p472_p1 = pnand %p471_p0, %p465_p11 }
  0x22   :  { %475 = shalt.err (!%p472_p1)
}
  0x23   :  { %22 = dma.hbm_to_vmem [thread:$0]  %s619_s0, 256, %s20_s8, [#allocation3]  }
  0x24   :  { %s476_s22 = scalar_lea.hbm %s622_s3, 4096 }
  0x25   :  { %p477_p2 = scmp.ne.s32.totalorder %s622_s3, %s476_s22  ;;  %p480_p3 = scmp.lt.u32.totalorder %s476_s22, %s622_s3 }
  0x27   :  { %p482_p4 = pnand %p480_p3, %p477_p2 }
  0x29   :  { %485 = shalt.err (!%p482_p4)
}
  0x2a   :  { %s486_s27 = scalar_lea.vmem %s43_s10, 4096  ;;  %p491_p6 = scmp.lt.s32.totalorder %s43_s10, %s43_s10 }
  0x2b   :  { %p487_p5 = scmp.ne.s32.totalorder %s43_s10, %s486_s27  ;;  %p492_p7 = scmp.lt.s32.totalorder %s486_s27, %s486_s27 }
  0x2d   :  { %p493_p8 = por %p492_p7, %p491_p6 }
  0x2f   :  { %p494_p9 = pnand %p493_p8, %p487_p5 }
  0x31   :  { %497 = shalt.err (!%p494_p9)
}
  0x32   :  { %s531_s0 = smov 256   ;;  %s532_s28 = smov 16  }
  0x33   :  { %48 = dma.hbm_to_vmem [thread:$0]  %s622_s3, 4096, %s43_s10, [#allocation6], %s531_s0, %s531_s0, %s532_s28  }
  0x34   :  { %520 = dma.done.wait [#allocation3], 256  }
  0x35   :  { %521 = vsyncadd [#allocation3], 4294967040 }
  0x36   :  { %522 = dma.done.wait [#allocation6], 8192  }
  0x37   :  { %523 = vsyncadd [#allocation6], 4294959104  ;;  %v78_v0 = vld [vmem:[#allocation5 + $0x80] sm:$0xff]  ;;  %v79_v1 = vld [vmem:[#allocation5 + $0x88] sm:$0xff] }
  0x38   :  { %v62_v2 = vld [vmem:[#allocation5] sm:$0xff]  ;;  %v351_v3 = vpack.c.bf16 %v79_v1, %v78_v0  ;;  %v63_v4 = vld [vmem:[#allocation5 + $0x8] sm:$0xff]  ;;  %v80_v5 = vld [vmem:[#allocation5 + $0x90] sm:$0xff] }
  0x39   :  { %v81_v6 = vld [vmem:[#allocation5 + $0x98] sm:$0xff]  ;;  %v353_v7 = vpack.c.bf16 %v63_v4, %v62_v2  ;;  %v64_v9 = vld [vmem:[#allocation5 + $0x10] sm:$0xff]  ;;  %v82_v11 = vld [vmem:[#allocation5 + $0xa0] sm:$0xff] }
  0x3a   :  { %v355_v8 = vpack.c.bf16 %v81_v6, %v80_v5  ;;  %v65_v10 = vld [vmem:[#allocation5 + $0x18] sm:$0xff]  ;;  %352 = vmatprep.subr.bf16.mxu0 %v351_v3  ;;  %v83_v12 = vld [vmem:[#allocation5 + $0xa8] sm:$0xff]  ;;  %v66_v15 = vld [vmem:[#allocation5 + $0x20] sm:$0xff] }
  0x3b   :  { %354 = vmatpush3.bf16.msra.mxu0 %v353_v7  ;;  %v357_v13 = vpack.c.bf16 %v65_v10, %v64_v9  ;;  %v359_v14 = vpack.c.bf16 %v83_v12, %v82_v11  ;;  %v67_v16 = vld [vmem:[#allocation5 + $0x28] sm:$0xff]  ;;  %v84_v17 = vld [vmem:[#allocation5 + $0xb0] sm:$0xff]  ;;  %v85_v18 = vld [vmem:[#allocation5 + $0xb8] sm:$0xff] }
  0x3c   :  { %356 = vmatprep.subr.bf16.mxu0 %v355_v8  ;;  %v361_v19 = vpack.c.bf16 %v67_v16, %v66_v15  ;;  %v363_v20 = vpack.c.bf16 %v85_v18, %v84_v17  ;;  %v68_v21 = vld [vmem:[#allocation5 + $0x30] sm:$0xff]  ;;  %v69_v22 = vld [vmem:[#allocation5 + $0x38] sm:$0xff]  ;;  %v86_v23 = vld [vmem:[#allocation5 + $0xc0] sm:$0xff] }
  0x3d   :  { %v87_v24 = vld [vmem:[#allocation5 + $0xc8] sm:$0xff]  ;;  %v61_v25 = vld [vmem:[#allocation2 + $0x8] sm:$0xff]  ;;  %v70_v26 = vld [vmem:[#allocation5 + $0x40] sm:$0xff]  ;;  %v365_v30 = vpack.c.bf16 %v69_v22, %v68_v21 }
  0x3e   :  { %v71_v27 = vld [vmem:[#allocation5 + $0x48] sm:$0xff]  ;;  %165 = vmatprep.mubr.f32.mxu0 %v61_v25  ;;  %v175_v29 = vld [vmem:[#allocation7 + $0x18] sm:$0xff]  ;;  %v88_v31 = vld [vmem:[#allocation5 + $0xd0] sm:$0xff]  ;;  %v367_v36 = vpack.c.bf16 %v87_v24, %v86_v23 }
  0x3f   :  { %358 = vmatpush3.bf16.msra.mxu0 %v357_v13  ;;  %v173_v28 = vld [vmem:[#allocation7 + $0x8] sm:$0xff]  ;;  %v172_v33 = vld [vmem:[#allocation7] sm:$0xff]  ;;  %v174_v34 = vld [vmem:[#allocation7 + $0x10] sm:$0xff]  ;;  %v369_v46 = vpack.c.bf16 %v71_v27, %v70_v26 }
  0x40   :  { %360 = vmatprep.subr.bf16.mxu0 %v359_v14  ;;  %v383_v32 = vpack.c.bf16 %v175_v29, %v173_v28  ;;  %v177_v35 = vld [vmem:[#allocation7 + $0x28] sm:$0xff]  ;;  %v385_v37 = vpack.c.bf16 %v174_v34, %v172_v33  ;;  %v179_v38 = vld [vmem:[#allocation7 + $0x38] sm:$0xff]  ;;  %v176_v39 = vld [vmem:[#allocation7 + $0x20] sm:$0xff]  ;;  %v533_v34 = vmov 0.0  }
  0x41   :  { %v178_v40 = vld [vmem:[#allocation7 + $0x30] sm:$0xff]  ;;  %v89_v41 = vld [vmem:[#allocation5 + $0xd8] sm:$0xff]  ;;  %v387_v42 = vpack.c.bf16 %v179_v38, %v177_v35  ;;  %v181_v43 = vld [vmem:[#allocation7 + $0x48] sm:$0xff]  ;;  %280 = vmatprep.mubr.f32.mxu1 %v533_v34 }
  0x42   :  { %384 = vmatprep.subr.bf16.mxu1 %v383_v32  ;;  %v183_v44 = vld [vmem:[#allocation7 + $0x58] sm:$0xff]  ;;  %v389_v45 = vpack.c.bf16 %v178_v40, %v176_v39  ;;  %v72_v47 = vld [vmem:[#allocation5 + $0x50] sm:$0xff]  ;;  %v180_v49 = vld [vmem:[#allocation7 + $0x40] sm:$0xff]  ;;  %v371_v51 = vpack.c.bf16 %v89_v41, %v88_v31  ;;  %v206_v41 = vlaneseq }
  0x43   :  { %362 = vmatpush3.bf16.msra.mxu0 %v361_v19  ;;  %386 = vmatpush1.bf16.msra.mxu1 %v385_v37  ;;  %v391_v48 = vpack.c.bf16 %v183_v44, %v181_v43  ;;  %v182_v50 = vld [vmem:[#allocation7 + $0x50] sm:$0xff]  ;;  %v73_v52 = vld [vmem:[#allocation5 + $0x58] sm:$0xff]  ;;  %v185_v53 = vld [vmem:[#allocation7 + $0x68] sm:$0xff] }
  0x44   :  { %364 = vmatprep.subr.bf16.mxu0 %v363_v20  ;;  %388 = vmatprep.subr.bf16.mxu1 %v387_v42  ;;  %v187_v54 = vld [vmem:[#allocation7 + $0x78] sm:$0xff]  ;;  %v90_v55 = vld [vmem:[#allocation5 + $0xe0] sm:$0xff]  ;;  %v91_v56 = vld [vmem:[#allocation5 + $0xe8] sm:$0xff]  ;;  %v393_v57 = vpack.c.bf16 %v182_v50, %v180_v49  ;;  %v373_v58 = vpack.c.bf16 %v73_v52, %v72_v47  ;;  %v207_v42 = vshrl.u32 %v206_v41, 7 }
  0x45   :  { %v74_v59 = vld [vmem:[#allocation5 + $0x60] sm:$0xff]  ;;  %v395_v60 = vpack.c.bf16 %v187_v54, %v185_v53  ;;  %v186_v62 = vld [vmem:[#allocation7 + $0x70] sm:$0xff]  ;;  %v375_v63 = vpack.c.bf16 %v91_v56, %v90_v55  ;;  %v75_v0 = vld [vmem:[#allocation5 + $0x68] sm:$0xff] }
  0x46   :  { %v184_v61 = vld [vmem:[#allocation7 + $0x60] sm:$0xff]  ;;  %v189_v1 = vld [vmem:[#allocation7 + $0x88] sm:$0xff]  ;;  %v191_v2 = vld [vmem:[#allocation7 + $0x98] sm:$0xff]  ;;  %v377_v6 = vpack.c.bf16 %v75_v0, %v74_v59  ;;  %v208_v43 = vsub.s32 0, %v207_v42 }
  0x47   :  { %366 = vmatpush3.bf16.msra.mxu0 %v365_v30  ;;  %390 = vmatpush1.bf16.msra.mxu1 %v389_v45  ;;  %v92_v3 = vld [vmem:[#allocation5 + $0xf0] sm:$0xff]  ;;  %v93_v4 = vld [vmem:[#allocation5 + $0xf8] sm:$0xff]  ;;  %v397_v5 = vpack.c.bf16 %v186_v62, %v184_v61  ;;  %v399_v8 = vpack.c.bf16 %v191_v2, %v189_v1  ;;  %v188_v9 = vld [vmem:[#allocation7 + $0x80] sm:$0xff]  ;;  %v212_v45 = vsub.s32 1, %v207_v42 }
  0x48   :  { %368 = vmatprep.subr.bf16.mxu0 %v367_v36  ;;  %392 = vmatprep.subr.bf16.mxu1 %v391_v48  ;;  %v76_v7 = vld [vmem:[#allocation5 + $0x70] sm:$0xff]  ;;  %v379_v11 = vpack.c.bf16 %v93_v4, %v92_v3  ;;  %v77_v12 = vld [vmem:[#allocation5 + $0x78] sm:$0xff]  ;;  %v193_v13 = vld [vmem:[#allocation7 + $0xa8] sm:$0xff] }
  0x49   :  { %v190_v10 = vld [vmem:[#allocation7 + $0x90] sm:$0xff]  ;;  %v195_v14 = vld [vmem:[#allocation7 + $0xb8] sm:$0xff]  ;;  %v381_v16 = vpack.c.bf16 %v77_v12, %v76_v7  ;;  %v192_v18 = vld [vmem:[#allocation7 + $0xa0] sm:$0xff] }
  0x4a   :  { %v401_v15 = vpack.c.bf16 %v190_v10, %v188_v9  ;;  %v403_v17 = vpack.c.bf16 %v195_v14, %v193_v13  ;;  %v194_v19 = vld [vmem:[#allocation7 + $0xb0] sm:$0xff]  ;;  %v197_v22 = vld [vmem:[#allocation7 + $0xc8] sm:$0xff]  ;;  %v199_v23 = vld [vmem:[#allocation7 + $0xd8] sm:$0xff] }
  0x4b   :  { %370 = vmatpush3.bf16.msra.mxu0 %v369_v46  ;;  %394 = vmatpush1.bf16.msra.mxu1 %v393_v57  ;;  %v405_v20 = vpack.c.bf16 %v194_v19, %v192_v18  ;;  %v60_v21 = vld [vmem:[#allocation2] sm:$0xff]  ;;  %v407_v24 = vpack.c.bf16 %v199_v23, %v197_v22  ;;  %v196_v25 = vld [vmem:[#allocation7 + $0xc0] sm:$0xff]  ;;  %v201_v28 = vld [vmem:[#allocation7 + $0xe8] sm:$0xff] }
  0x4c   :  { %372 = vmatprep.subr.bf16.mxu0 %v371_v51  ;;  %396 = vmatprep.subr.bf16.mxu1 %v395_v60  ;;  %v198_v26 = vld [vmem:[#allocation7 + $0xd0] sm:$0xff]  ;;  %v203_v29 = vld [vmem:[#allocation7 + $0xf8] sm:$0xff]  ;;  %v200_v31 = vld [vmem:[#allocation7 + $0xe0] sm:$0xff] }
  0x4d   :  { %v409_v27 = vpack.c.bf16 %v198_v26, %v196_v25  ;;  %v411_v30 = vpack.c.bf16 %v203_v29, %v201_v28  ;;  %v202_v32 = vld [vmem:[#allocation7 + $0xf0] sm:$0xff] }
  0x4e   :  { %v413_v33 = vpack.c.bf16 %v202_v32, %v200_v31  ;;  %v315_v36 = vld [vmem:[%s621_s2] ss:$0 sm:$0xff]  ;;  %s534_s2 = smov [#allocation8]  }
  0x4f   :  { %374 = vmatpush3.bf16.msra.mxu0 %v373_v58  ;;  %398 = vmatpush1.bf16.msra.mxu1 %v397_v5  ;;  %v204_v44 = vld [vmem:[%s623_s4] sm:$0x3]  ;;  %s305_s4 = sshll.u32 %s534_s2, 4  ;;  %s306_s4 = int_to_ptr.vmem [resolvable:$true] %s305_s4 }
  0x50   :  { %376 = vmatprep.subr.bf16.mxu0 %v375_v63  ;;  %400 = vmatprep.subr.bf16.mxu1 %v399_v8  ;;  %v209_v46 = vrot.slane %v204_v44, %v208_v43  ;;  %v213_v47 = vrot.slane %v204_v44, %v212_v45  ;;  %s498_s9 = scalar_lea.vmem %s306_s4, 256  ;;  %p503_p11 = scmp.lt.s32.totalorder %s306_s4, %s306_s4 }
  0x51   :  { %p499_p10 = scmp.ne.s32.totalorder %s306_s4, %s498_s9  ;;  %p504_p12 = scmp.lt.s32.totalorder %s498_s9, %s498_s9 }
  0x53   :  { %378 = vmatpush3.bf16.msra.mxu0 %v377_v6  ;;  %402 = vmatpush1.bf16.msra.mxu1 %v401_v15  ;;  %p505_p13 = por %p504_p12, %p503_p11 }
  0x54   :  { %380 = vmatprep.subr.bf16.mxu0 %v379_v11  ;;  %404 = vmatprep.subr.bf16.mxu1 %v403_v17 }
  0x55   :  { %p506_p0 = pnand %p505_p13, %p499_p10 }
  0x57   :  { %382 = vmatpush3.bf16.msra.mxu0 %v381_v16  ;;  %406 = vmatpush1.bf16.msra.mxu1 %v405_v20 }
  0x58   :  { %408 = vmatprep.subr.bf16.mxu1 %v407_v24 }
  0x5a   :  { %166 = vmatmul.mubr.f32.vlgmr.msra.gmra.mrb[0].mxu0 %v60_v21 }
  0x5b   :  { %410 = vmatpush1.bf16.msra.mxu1 %v409_v27 }
  0x5c   :  { %412 = vmatprep.subr.bf16.mxu1 %v411_v30 }
  0x5f   :  { %414 = vmatpush1.bf16.msra.mxu1 %v413_v33 }
 0x12d   :  { %v348_v35 = vpop.f32.mrb[0].mxu0 }
 0x12e   :  { %v349_v37 = vpop.f32.mrb[1].mxu0 }
 0x12f   :  { %v350_v38 = vadd.f32 %v349_v37, %v348_v35 }
 0x131   :  { %v168_v39 = vadd.f32 %v350_v38, %v315_v36 }
 0x133   :  { %v171_v40 = vmax.f32 %v168_v39, 0.0 }
 0x135   :  { %281 = vmatmul.mubr.f32.vlgmr.msra.gmra.mrb[0].mxu1 %v171_v40 }
 0x208   :  { %v282_v48 = vpop.f32.mrb[0].mxu1 }
 0x209   :  { %v283_v49 = vadd.f32 %v282_v48, %v209_v46  ;;  %v284_v50 = vpop.f32.mrb[1].mxu1 }
 0x20a   :  { %v285_v51 = vadd.f32 %v284_v50, %v213_v47 }
 0x20b   :  { %v287_v52 = vsub.f32 0.0, %v283_v49 }
 0x20c   :  { %v288_v53 = vsub.f32 0.0, %v285_v51 }
 0x20d   :  { %v289_v54 = vmul.f32 1.442695, %v287_v52 }
 0x20e   :  { %v291_v55 = vmul.f32 1.442695, %v288_v53 }
 0x20f   :  { %424 = vpow2.f32 %v289_v54 }
 0x210   :  { %426 = vpow2.f32 %v291_v55 }
 0x219   :  { %v425_v56 = vpop.eup %424 }
 0x21a   :  { %v427_v57 = vpop.eup %426  ;;  %v293_v58 = vadd.f32 1.0, %v425_v56 }
 0x21b   :  { %v294_v59 = vadd.f32 1.0, %v427_v57 }
 0x21c   :  { %428 = vrcp.f32 %v293_v58 }
 0x21d   :  { %430 = vrcp.f32 %v294_v59 }
 0x226   :  { %v429_v60 = vpop.eup %428 }
 0x227   :  { %v431_v61 = vpop.eup %430  ;;  %297 = vst [vmem:[#allocation8] sm:$0xff] %v429_v60 }
 0x228   :  { %298 = vst [vmem:[#allocation8 + $0x8] sm:$0xff] %v431_v61 }
 0x229   :  { %509 = shalt.err (!%p506_p0)
}
 0x22a   :  { %s510_s12 = scalar_lea.hbm %s624_s5, 256 }
 0x22b   :  { %p511_p1 = scmp.ne.s32.totalorder %s624_s5, %s510_s12  ;;  %p514_p2 = scmp.lt.u32.totalorder %s510_s12, %s624_s5 }
 0x22d   :  { %p516_p3 = pnand %p514_p2, %p511_p1 }
 0x22f   :  { %519 = shalt.err (!%p516_p3)
}
 0x230   :  { %308 = dma.vmem_to_hbm [thread:$0]  %s306_s4, 256, %s624_s5, [#allocation4]  }
 0x231   :  { %524 = dma.done.wait [#allocation4], 256  }
 0x232   :  { %525 = vsyncadd [#allocation4], 4294967040 }
 0x233   :  { %312 = vsyncpa [#allocation3], 1 }
 0x234   :  { %313 = vsyncpa [#allocation6], 1 }
 0x235   :  { %314 = vsyncpa [#allocation4], 1 }

</bundles_post_ra>
